<compile_context>
chip_gen: v6e
topology: v6e:2x2x1
jax: 0.10.0
libtpu: 0.0.40
codegen_flags: <defaults>
</compile_context>

<pallas_src>
import numpy as np
import jax
import jax.numpy as jnp
from jax.experimental import pallas as pl
from jax.experimental.pallas import tpu as pltpu

# Max outstanding HBM->HBM DMAs (ring of DMA semaphores). 8 in-flight strided
# copies are plenty to saturate HBM on every generation; bounding the queue
# keeps semaphore bookkeeping trivial.
_MAX_IN_FLIGHT = 8


def _contiguous_runs(idx):
    """Sorted unique channel indices -> list of (src_start, dst_start, length)."""
    runs = []
    start = prev = int(idx[0])
    dst = 0
    for v in map(int, idx[1:]):
        if v == prev + 1:
            prev = v
            continue
        length = prev - start + 1
        runs.append((start, dst, length))
        dst += length
        start = prev = v
    runs.append((start, dst, prev - start + 1))
    return runs


def _make_gather_kernel(runs, ring):
    """Build an HBM->HBM gather kernel: one strided DMA per contiguous run.

    x_ref: (N, C, H*W) in HBM, o_ref: (N, K, H*W) in HBM.  All run bounds are
    Python ints (known at trace time), so every slice / semaphore index is
    static.  Each semaphore slot has at most one outstanding DMA (we wait on a
    slot before reusing it), and every issued DMA is waited before kernel end.
    """

    def kernel(x_ref, o_ref, sem):
        def dma(i):
            s, d, length = runs[i]
            return pltpu.make_async_copy(
                x_ref.at[:, pl.ds(s, length)],
                o_ref.at[:, pl.ds(d, length)],
                sem.at[i % ring],
            )

        n = len(runs)
        for i in range(n):
            if i >= ring:
                dma(i - ring).wait()   # free this semaphore slot before reuse
            dma(i).start()
        for i in range(max(0, n - ring), n):
            dma(i).wait()              # drain the tail

    return kernel


def channel_selection_forward(x, indexes):
    """x: (N, C, H, W) array; indexes: (C,) parameter (ones at init).

    Host-side glue replicates the PyTorch module exactly (np.argwhere /
    np.resize); the data-dependent output shape forces a device->host sync,
    so do not call this under jit.
    """
    idx_np = np.squeeze(np.argwhere(np.asarray(indexes)))
    if idx_np.size == 1:
        idx_np = np.resize(idx_np, (1,))
    idx_np = np.asarray(idx_np, dtype=np.int64).reshape(-1)

    N, C, H, W = x.shape
    K = int(idx_np.size)

    # Free wins: nothing selected / nothing pruned.
    if K == 0:
        return x[:, :0, :, :]
    if K == C:
        # All channels kept (the init state): identity, skip the copy entirely.
        return x

    runs = _contiguous_runs(idx_np)

    if len(runs) == 1:
        # Single contiguous kept block (very common in structured pruning):
        # a plain XLA slice, no Pallas call and no kernel compile.
        s, _, length = runs[0]
        return jax.lax.slice_in_dim(x, s, s + length, axis=1)

    HW = H * W
    x_r = x.reshape(N, C, HW)          # free view: merges trailing dims only
    ring = min(_MAX_IN_FLIGHT, len(runs))
    itemsize = np.dtype(x.dtype).itemsize

    out = pl.pallas_call(
        _make_gather_kernel(runs, ring),
        out_shape=jax.ShapeDtypeStruct((N, K, HW), x.dtype),
        in_specs=[pl.BlockSpec(memory_space=pl.ANY)],   # stay in HBM
        out_specs=pl.BlockSpec(memory_space=pl.ANY),    # stay in HBM
        scratch_shapes=[pltpu.SemaphoreType.DMA((ring,))],
        # Advisory hint so XLA can overlap this memory-bound gather with
        # surrounding model compute.
        cost_estimate=pl.CostEstimate(
            flops=0,
            transcendentals=0,
            bytes_accessed=2 * N * K * HW * itemsize,
        ),
    )(x_r)

    return out.reshape(N, K, H, W)


if __name__ == "__main__":
    key = jax.random.PRNGKey(0)
    N, C, H, W = 2, 4, 16, 16
    x = jax.random.normal(key, (N, C, H, W), dtype=jnp.float32)
    x_np = np.asarray(x)

    # 1) Init state: all-ones indexes -> identity selection (short-circuited).
    ones = jnp.ones((C,), dtype=jnp.float32)
    out = jax.block_until_ready(channel_selection_forward(x, ones))
    assert out.shape == (N, C, H, W)
    np.testing.assert_array_equal(np.asarray(out), x_np)

    # 2) Scattered pruning -> two single-channel runs: HBM->HBM DMA kernel.
    pruned = jnp.array([1.0, 0.0, 1.0, 0.0], dtype=jnp.float32)
    out_p = jax.block_until_ready(channel_selection_forward(x, pruned))
    assert out_p.shape == (N, 2, H, W)
    np.testing.assert_array_equal(np.asarray(out_p), x_np[:, [0, 2], :, :])

    # 3) Single selected channel: exercises the np.resize scalar path
    #    (single contiguous run -> lax.slice short-circuit).
    one_ch = jnp.array([0.0, 0.0, 0.0, 1.0], dtype=jnp.float32)
    out_1 = jax.block_until_ready(channel_selection_forward(x, one_ch))
    assert out_1.shape == (N, 1, H, W)
    np.testing.assert_array_equal(np.asarray(out_1), x_np[:, [3], :, :])

    # 4) Contiguous kept block: lax.slice short-circuit (no kernel).
    contig = jnp.array([0.0, 1.0, 1.0, 0.0], dtype=jnp.float32)
    out_c = jax.block_until_ready(channel_selection_forward(x, contig))
    assert out_c.shape == (N, 2, H, W)
    np.testing.assert_array_equal(np.asarray(out_c), x_np[:, 1:3, :, :])

    # 5) Mixed run lengths + spatial size not divisible by 128: kernel path
    #    with variable-length strided DMAs (lane layout is irrelevant here).
    C2 = 8
    x2 = jax.random.normal(jax.random.PRNGKey(0), (2, C2, 12, 12), jnp.float32)
    mixed = jnp.array([1.0, 1.0, 0.0, 1.0, 1.0, 1.0, 0.0, 0.0], jnp.float32)
    out_m = jax.block_until_ready(channel_selection_forward(x2, mixed))
    assert out_m.shape == (2, 5, 12, 12)
    np.testing.assert_array_equal(
        np.asarray(out_m), np.asarray(x2)[:, [0, 1, 3, 4, 5], :, :]
    )

    print("KERNEL_OK")
</pallas_src>

<mosaic_0001>
module attributes {stable_mosaic.version = 11 : i64} {
  func.func @kernel(%arg0: memref<2x4x256xf32, #tpu.memory_space<any>>, %arg1: memref<2x2x256xf32, #tpu.memory_space<any>>, %arg2: memref<2x!tpu.dma_semaphore, #tpu.memory_space<semaphore_mem>>) attributes {dimension_semantics = [], scalar_prefetch = 0 : i64, scratch_operands = 1 : i64, tpu.core_type = #tpu.core_type<tc>} {
    %c0_i32 = arith.constant 0 : i32
    %c0_i32_0 = arith.constant 0 : i32
    %c0_i32_1 = arith.constant 0 : i32
    %c0_i32_2 = arith.constant 0 : i32
    %0 = tpu.memref_slice %arg0[%c0_i32_0, %c0_i32_1, %c0_i32_2] : memref<2x4x256xf32, #tpu.memory_space<any>> -> memref<2x1x256xf32, #tpu.memory_space<any>>
    %c0_i32_3 = arith.constant 0 : i32
    %c0_i32_4 = arith.constant 0 : i32
    %c0_i32_5 = arith.constant 0 : i32
    %1 = tpu.memref_slice %arg1[%c0_i32_3, %c0_i32_4, %c0_i32_5] : memref<2x2x256xf32, #tpu.memory_space<any>> -> memref<2x1x256xf32, #tpu.memory_space<any>>
    %2 = tpu.memref_slice %arg2[%c0_i32] : memref<2x!tpu.dma_semaphore, #tpu.memory_space<semaphore_mem>> -> memref<1x!tpu.dma_semaphore, #tpu.memory_space<semaphore_mem>>
    %3 = tpu.memref_squeeze %2 : memref<1x!tpu.dma_semaphore, #tpu.memory_space<semaphore_mem>> -> memref<!tpu.dma_semaphore, #tpu.memory_space<semaphore_mem>>
    tpu.enqueue_dma source(%0 : memref<2x1x256xf32, #tpu.memory_space<any>>) target(%1 : memref<2x1x256xf32, #tpu.memory_space<any>>) target_semaphore(%3 : memref<!tpu.dma_semaphore, #tpu.memory_space<semaphore_mem>>)
    %c1_i32 = arith.constant 1 : i32
    %c0_i32_6 = arith.constant 0 : i32
    %c2_i32 = arith.constant 2 : i32
    %c0_i32_7 = arith.constant 0 : i32
    %4 = tpu.memref_slice %arg0[%c0_i32_6, %c2_i32, %c0_i32_7] : memref<2x4x256xf32, #tpu.memory_space<any>> -> memref<2x1x256xf32, #tpu.memory_space<any>>
    %c0_i32_8 = arith.constant 0 : i32
    %c1_i32_9 = arith.constant 1 : i32
    %c0_i32_10 = arith.constant 0 : i32
    %5 = tpu.memref_slice %arg1[%c0_i32_8, %c1_i32_9, %c0_i32_10] : memref<2x2x256xf32, #tpu.memory_space<any>> -> memref<2x1x256xf32, #tpu.memory_space<any>>
    %6 = tpu.memref_slice %arg2[%c1_i32] : memref<2x!tpu.dma_semaphore, #tpu.memory_space<semaphore_mem>> -> memref<1x!tpu.dma_semaphore, #tpu.memory_space<semaphore_mem>>
    %7 = tpu.memref_squeeze %6 : memref<1x!tpu.dma_semaphore, #tpu.memory_space<semaphore_mem>> -> memref<!tpu.dma_semaphore, #tpu.memory_space<semaphore_mem>>
    tpu.enqueue_dma source(%4 : memref<2x1x256xf32, #tpu.memory_space<any>>) target(%5 : memref<2x1x256xf32, #tpu.memory_space<any>>) target_semaphore(%7 : memref<!tpu.dma_semaphore, #tpu.memory_space<semaphore_mem>>)
    %c0_i32_11 = arith.constant 0 : i32
    %c0_i32_12 = arith.constant 0 : i32
    %c0_i32_13 = arith.constant 0 : i32
    %c0_i32_14 = arith.constant 0 : i32
    %8 = tpu.memref_slice %arg0[%c0_i32_12, %c0_i32_13, %c0_i32_14] : memref<2x4x256xf32, #tpu.memory_space<any>> -> memref<2x1x256xf32, #tpu.memory_space<any>>
    %c0_i32_15 = arith.constant 0 : i32
    %c0_i32_16 = arith.constant 0 : i32
    %c0_i32_17 = arith.constant 0 : i32
    %9 = tpu.memref_slice %arg1[%c0_i32_15, %c0_i32_16, %c0_i32_17] : memref<2x2x256xf32, #tpu.memory_space<any>> -> memref<2x1x256xf32, #tpu.memory_space<any>>
    %10 = tpu.memref_slice %arg2[%c0_i32_11] : memref<2x!tpu.dma_semaphore, #tpu.memory_space<semaphore_mem>> -> memref<1x!tpu.dma_semaphore, #tpu.memory_space<semaphore_mem>>
    %11 = tpu.memref_squeeze %10 : memref<1x!tpu.dma_semaphore, #tpu.memory_space<semaphore_mem>> -> memref<!tpu.dma_semaphore, #tpu.memory_space<semaphore_mem>>
    tpu.wait_dma2 semaphore(%11 : memref<!tpu.dma_semaphore, #tpu.memory_space<semaphore_mem>>) src(%8 : memref<2x1x256xf32, #tpu.memory_space<any>>) dst(%9 : memref<2x1x256xf32, #tpu.memory_space<any>>)
    %c1_i32_18 = arith.constant 1 : i32
    %c0_i32_19 = arith.constant 0 : i32
    %c2_i32_20 = arith.constant 2 : i32
    %c0_i32_21 = arith.constant 0 : i32
    %12 = tpu.memref_slice %arg0[%c0_i32_19, %c2_i32_20, %c0_i32_21] : memref<2x4x256xf32, #tpu.memory_space<any>> -> memref<2x1x256xf32, #tpu.memory_space<any>>
    %c0_i32_22 = arith.constant 0 : i32
    %c1_i32_23 = arith.constant 1 : i32
    %c0_i32_24 = arith.constant 0 : i32
    %13 = tpu.memref_slice %arg1[%c0_i32_22, %c1_i32_23, %c0_i32_24] : memref<2x2x256xf32, #tpu.memory_space<any>> -> memref<2x1x256xf32, #tpu.memory_space<any>>
    %14 = tpu.memref_slice %arg2[%c1_i32_18] : memref<2x!tpu.dma_semaphore, #tpu.memory_space<semaphore_mem>> -> memref<1x!tpu.dma_semaphore, #tpu.memory_space<semaphore_mem>>
    %15 = tpu.memref_squeeze %14 : memref<1x!tpu.dma_semaphore, #tpu.memory_space<semaphore_mem>> -> memref<!tpu.dma_semaphore, #tpu.memory_space<semaphore_mem>>
    tpu.wait_dma2 semaphore(%15 : memref<!tpu.dma_semaphore, #tpu.memory_space<semaphore_mem>>) src(%12 : memref<2x1x256xf32, #tpu.memory_space<any>>) dst(%13 : memref<2x1x256xf32, #tpu.memory_space<any>>)
    return
  }
}

</mosaic_0001>

<bundles_post_ra>
// kernel: tpu_custom_call.1
= control target key start
LH: loop header
LB: loop body
LE: loop exit
PB: predicated region body
PF: predicated region fallthrough
CT: control target
= control target key end

     0   :  { %s67_s6 = smov 64   ;;  %s68_s7 = smov 32   ;;  %s96_s0 = inlined_call_operand.hbm [shape: f32[2,4,256], index: 0, kind: input, shape index: {}]   ;;  %s97_s1 = inlined_call_operand.hbm [shape: f32[2,2,256], index: 1, kind: output, shape index: {}]  }
   0x1   :  { %12 = sst [smem:[#allocation4]] %s67_s6  ;;  %s69_s8 = smov 1  }
   0x2   :  { %14 = sst [smem:[#allocation4 + $0x1]] %s68_s7  ;;  %s19_s11 = scalar_lea.hbm %s96_s0, 32 }
   0x3   :  { %16 = sst [smem:[#allocation4 + $0x2]] %s69_s8  ;;  %s70_s12 = smov [#allocation2]  }
   0x4   :  { %s71_s13 = smov 131072   ;;  %s72_s14 = smov 0  }
   0x5   :  { %18 = dma.general %s96_s0, 64, %s97_s1, %s70_s12, %s71_s13, [#allocation4], %s72_s14, 0  }
   0x6   :  { %28 = sst [smem:[#allocation6]] %s67_s6  ;;  %s20_s21 = scalar_lea.hbm %s97_s1, 16 }
   0x7   :  { %30 = sst [smem:[#allocation6 + $0x1]] %s68_s7  ;;  %s73_s22 = smov [#allocation2 + $0x1]  }
   0x8   :  { %32 = sst [smem:[#allocation6 + $0x2]] %s69_s8 }
   0x9   :  { %34 = dma.general %s19_s11, 64, %s20_s21, %s73_s22, %s71_s13, [#allocation6], %s72_s14, 0  }
   0xa   :  { %63 = dma.done.wait [#allocation2], 64 }
   0xb   :  { %64 = vsyncadd [#allocation2], 4294967232 }
   0xc   :  { %65 = dma.done.wait [#allocation2 + $0x1], 64 }
   0xd   :  { %66 = vsyncadd [#allocation2 + $0x1], 4294967232 }
   0xe   :  { %41 = vsyncmov [#allocation2] }
  0x11   :  { %s42_s23 = vpop.sfrf %41 }
  0x12   :  { %p54_p0 = scmp.ne.s32.totalorder %s42_s23, 0 }
  0x14   :  { %46 = shalt.err (%p54_p0)  }
  0x15   :  { %48 = vsyncmov [#allocation2 + $0x1] }
  0x18   :  { %s49_s24 = vpop.sfrf %48 }
  0x19   :  { %p55_p1 = scmp.ne.s32.totalorder %s49_s24, 0 }
  0x1b   :  { %53 = shalt.err (%p55_p1)  }

</bundles_post_ra>
